<compile_context>
chip_gen: v7x
topology: tpu7x:2x2x1
jax: 0.10.0
libtpu: 0.0.40
codegen_flags: <defaults>
</compile_context>

<pallas_src>
import functools
import math

import jax
import jax.numpy as jnp
from jax import lax
from jax.experimental import pallas as pl
from jax.experimental.pallas import tpu as pltpu

_INV_SQRT2 = 0.7071067811865476          # 1/sqrt(2)
_SQRT_2_OVER_PI = 0.7978845608028654     # sqrt(2/pi)


def _gelu(x, approximate=False):
    if approximate:
        # tanh-approximate GELU (EUP tanh); opt-in only - numerics differ
        # slightly from the PyTorch exact-erf reference.
        return 0.5 * x * (1.0 + jnp.tanh(_SQRT_2_OVER_PI * (x + 0.044715 * x * x * x)))
    # Exact erf-GELU (matches the PyTorch reference), computed in f32.
    return x * 0.5 * (1.0 + lax.erf(x * _INV_SQRT2))


def _round_up(x, m):
    return ((x + m - 1) // m) * m


def _pick_chunk(n):
    """Largest of (512, 256, 128) that divides n, else n itself."""
    for c in (512, 256, 128):
        if n % c == 0:
            return c
    return n


def _vmem_capacity_bytes():
    try:
        cap = int(pltpu.get_tpu_info().vmem_capacity_bytes)
        if cap >= (32 << 20):
            return cap
    except Exception:
        pass
    return 64 << 20  # conservative fallback (v7x per-TensorCore VMEM)


def _probe_single_buffering():
    """Can we single-buffer constant-index operands (pipeline_mode=Buffered(1))?

    Probed once with a trivial kernel so the real kernel never risks a
    compile failure on runtimes that reject buffer_count=1."""
    try:
        def _k(x_ref, o_ref):
            o_ref[...] = x_ref[...]

        f = pl.pallas_call(
            _k,
            out_shape=jax.ShapeDtypeStruct((8, 128), jnp.float32),
            grid=(1,),
            in_specs=[pl.BlockSpec((8, 128), lambda i: (0, 0),
                                   pipeline_mode=pl.Buffered(1))],
            out_specs=pl.BlockSpec((8, 128), lambda i: (0, 0)),
        )
        jax.block_until_ready(f(jnp.zeros((8, 128), jnp.float32)))
        return True
    except Exception:
        return False


_HAS_SINGLE_BUFFER = _probe_single_buffering()


def _bert_intermediate_kernel(x_ref, w_ref, b_ref, o_ref, *, n_chunk, approximate):
    # x_ref: (tm, H)  w_ref: (H, N)  b_ref: (1, N) f32  o_ref: (tm, N)
    x = x_ref[...]
    n_total = o_ref.shape[-1]
    # Static chunked epilogue: matmul of chunk j+1 (MXU/vex slot) overlaps the
    # GELU + store of chunk j (VALU/EUP/vst slots); the f32 intermediate is
    # bounded to (tm, n_chunk) instead of (tm, N).
    for j in range(n_total // n_chunk):
        c0 = j * n_chunk
        acc = jnp.dot(x, w_ref[:, c0:c0 + n_chunk],
                      preferred_element_type=jnp.float32)
        acc = acc + b_ref[:, c0:c0 + n_chunk]          # bias in f32
        o_ref[:, c0:c0 + n_chunk] = _gelu(acc, approximate).astype(o_ref.dtype)


def _plan_tiles(M, H, I, x_isz, w_isz, out_isz, align, budget, w_resident_bufs):
    """Pick (tm, tn, n_chunk, weight_resident, est_bytes) under the VMEM budget."""

    def fp(tm, tn, n_chunk, w_bufs):
        return (2 * tm * H * x_isz              # x tile (double-buffered)
                + w_bufs * H * tn * w_isz       # weight block
                + w_bufs * tn * 4               # f32 bias block
                + 2 * tm * tn * out_isz         # output tile (double-buffered)
                + 3 * tm * n_chunk * 4)         # f32 chunk accumulator + GELU temps

    m_cap = _round_up(M, align)
    chunk_full = _pick_chunk(I)

    # Preferred plan: whole (H, I) weight resident in VMEM (DMA'd from HBM
    # exactly once); grid is a single parallel axis over row blocks.
    if fp(align, I, chunk_full, w_resident_bufs) <= budget:
        tm = m_cap
        # Keep >=2 parallel row blocks when possible (v7x has 2 TensorCores).
        if M >= 2 * align:
            tm = min(tm, _round_up(-(-M // 2), align))
        while tm > align and fp(tm, I, chunk_full, w_resident_bufs) > budget:
            tm = max(align, _round_up(tm // 2, align))
        return tm, I, chunk_full, True, fp(tm, I, chunk_full, w_resident_bufs)

    # Fallback: tile I too.  I is the OUTER grid axis so each (H, tn) weight
    # block stays resident across the whole inner M loop.  Keep tn >= 256 to
    # fill the 256-wide MXU on v6e/v7x.
    tn = min(2048, _round_up(I, 128))
    tm = min(1024, m_cap)
    chunk = _pick_chunk(tn)
    while fp(tm, tn, chunk, 2) > budget:
        if tm > align:
            tm = max(align, _round_up(tm // 2, align))
        elif tn > 256:
            tn = max(256, _round_up(tn // 2, 128))
            chunk = _pick_chunk(tn)
        else:
            break
    return tm, tn, chunk, False, fp(tm, tn, chunk, 2)


@functools.partial(jax.jit, static_argnames=("compute_dtype", "approximate"))
def bert_intermediate(hidden_states, weight, bias, *,
                      compute_dtype=jnp.bfloat16, approximate=False):
    """BertIntermediate forward: gelu(hidden_states @ weight + bias).

    hidden_states: (..., H); weight: (H, I); bias: (I,) -> (..., I).
    compute_dtype: matmul-input dtype (bf16 default - MXU-native on all TPU
    generations); accumulation, bias-add and GELU always stay in f32.  Pass
    compute_dtype=jnp.float32 (or None) for an exact-f32 matmul.
    For serving, pre-cast `weight` to compute_dtype once outside this call so
    no per-call W-sized cast pass is traced.
    """
    orig_shape = hidden_states.shape
    H = orig_shape[-1]
    Hw, I = weight.shape
    assert Hw == H, "weight shape mismatch"
    out_dtype = hidden_states.dtype

    M = 1
    for d in orig_shape[:-1]:
        M *= int(d)

    x2d = hidden_states.reshape(M, H)
    if compute_dtype is not None:
        if x2d.dtype != compute_dtype:
            x2d = x2d.astype(compute_dtype)
        if weight.dtype != compute_dtype:
            weight = weight.astype(compute_dtype)
    b2d = bias.reshape(1, I).astype(jnp.float32)

    x_isz = jnp.dtype(x2d.dtype).itemsize
    w_isz = jnp.dtype(weight.dtype).itemsize
    out_isz = jnp.dtype(out_dtype).itemsize
    align = {4: 8, 2: 16, 1: 32}.get(x_isz, 8)   # sublane packing of the x tile

    capacity = _vmem_capacity_bytes()
    budget = int(capacity * 0.72)                # generation-aware VMEM budget

    tm, tn, chunk, resident, est = _plan_tiles(
        M, H, I, x_isz, w_isz, out_isz, align, budget,
        w_resident_bufs=1 if _HAS_SINGLE_BUFFER else 2)

    # est covers tiles + accumulator; +4 MiB for erf temporaries / Mosaic
    # internal scratch.
    vmem_limit = int(min(max(est + (4 << 20), 32 << 20), capacity - (2 << 20)))

    kernel = functools.partial(_bert_intermediate_kernel,
                               n_chunk=chunk, approximate=approximate)

    def _const_spec(shape):
        # Constant-index operand: DMA'd from HBM once; single-buffered when
        # supported so the weight copy's VMEM is reclaimed for bigger tm.
        if _HAS_SINGLE_BUFFER:
            return pl.BlockSpec(shape, lambda i: (0, 0),
                                pipeline_mode=pl.Buffered(1))
        return pl.BlockSpec(shape, lambda i: (0, 0))

    if resident:
        # Weight (H, I) lives in VMEM for the whole kernel; single parallel
        # grid axis over row blocks (megacore-shardable).  Ragged last row
        # block is handled by Pallas masked stores (no jnp.pad pre-pass).
        grid = (pl.cdiv(M, tm),)
        in_specs = [
            pl.BlockSpec((tm, H), lambda i: (i, 0)),
            _const_spec((H, I)),
            _const_spec((1, I)),
        ]
        out_specs = pl.BlockSpec((tm, I), lambda i: (i, 0))
        dim_sem = ("parallel",)
    else:
        # I outer, M inner: each (H, tn) weight block is reused across the
        # entire inner M loop (weight streamed from HBM only ceil(I/tn) times).
        grid = (pl.cdiv(I, tn), pl.cdiv(M, tm))
        in_specs = [
            pl.BlockSpec((tm, H), lambda j, i: (i, 0)),
            pl.BlockSpec((H, tn), lambda j, i: (0, j)),
            pl.BlockSpec((1, tn), lambda j, i: (0, j)),
        ]
        out_specs = pl.BlockSpec((tm, tn), lambda j, i: (i, j))
        dim_sem = ("parallel", "parallel")

    out2d = pl.pallas_call(
        kernel,
        out_shape=jax.ShapeDtypeStruct((M, I), out_dtype),
        grid_spec=pltpu.PrefetchScalarGridSpec(
            num_scalar_prefetch=0,
            grid=grid,
            in_specs=in_specs,
            out_specs=out_specs,
        ),
        compiler_params=pltpu.CompilerParams(
            dimension_semantics=dim_sem,
            vmem_limit_bytes=vmem_limit,
        ),
    )(x2d, weight, b2d)

    return out2d.reshape(*orig_shape[:-1], I)


if __name__ == "__main__":
    # config: hidden_size=32, intermediate_size=128, hidden_act='gelu'
    B, S, H, I = 2, 8, 32, 128

    key = jax.random.PRNGKey(0)
    kx, kw, kb = jax.random.split(key, 3)

    hidden_states = jax.random.normal(kx, (B, S, H), dtype=jnp.float32)
    # deterministic nn.Linear-like init (synthetic; not a checkpoint load)
    weight = jax.random.normal(kw, (H, I), dtype=jnp.float32) * (1.0 / math.sqrt(H))
    bias = jax.random.normal(kb, (I,), dtype=jnp.float32) * 0.01

    # Reference (exact erf-GELU) in plain JAX.
    ref = hidden_states.reshape(-1, H) @ weight + bias
    ref = (ref * 0.5 * (1.0 + lax.erf(ref * _INV_SQRT2))).reshape(B, S, I)

    # Exact-f32 path (bit-level match to the PyTorch reference numerics).
    out_f32 = bert_intermediate(hidden_states, weight, bias,
                                compute_dtype=jnp.float32)
    jax.block_until_ready(out_f32)
    assert jnp.allclose(out_f32, ref, atol=1e-5, rtol=1e-5), "f32 mismatch vs reference"

    # Default bf16 matmul-input path (f32 accumulation / bias / GELU);
    # weight pre-cast once outside the call (hoisted param conversion).
    weight_bf16 = weight.astype(jnp.bfloat16)
    out_bf16 = bert_intermediate(hidden_states, weight_bf16, bias)
    jax.block_until_ready(out_bf16)
    assert jnp.allclose(out_bf16, ref, atol=3e-2, rtol=3e-2), "bf16 mismatch vs reference"

    print("KERNEL_OK")
</pallas_src>

<mosaic_0001>
module attributes {stable_mosaic.version = 11 : i64} {
  func.func @_k(%arg0: i32, %arg1: memref<8x128xf32, #tpu.memory_space<vmem>>, %arg2: memref<8x128xf32, #tpu.memory_space<vmem>>) attributes {dimension_semantics = [#tpu.dimension_semantics<arbitrary>], iteration_bounds = array<i64: 1>, scalar_prefetch = 0 : i64, scratch_operands = 0 : i64, tpu.core_type = #tpu.core_type<tc>, window_params = [{pipeline_mode = #tpu.pipeline_mode<synchronous>, transform_indices = @transform_0, window_bounds = array<i64: 8, 128>}, {pipeline_mode = #tpu.pipeline_mode<synchronous>, transform_indices = @transform_1, window_bounds = array<i64: 8, 128>}]} {
    %c0 = arith.constant 0 : index
    %c0_0 = arith.constant 0 : index
    %0 = vector.load %arg1[%c0, %c0_0] : memref<8x128xf32, #tpu.memory_space<vmem>>, vector<8x128xf32>
    %c0_1 = arith.constant 0 : index
    %c0_2 = arith.constant 0 : index
    %1 = vector.load %arg2[%c0_1, %c0_2] : memref<8x128xf32, #tpu.memory_space<vmem>>, vector<8x128xf32>
    tpu.vector_store %arg2[%c0_1, %c0_2], %0 {strides = array<i32>} : memref<8x128xf32, #tpu.memory_space<vmem>>, vector<8x128xf32>,
    return
  }
  func.func @transform_0(%arg0: i32) -> (i32, i32) {
    %c0_i32 = arith.constant 0 : i32
    %c0_i32_0 = arith.constant 0 : i32
    %c0_i32_1 = arith.constant 0 : i32
    return %c0_i32, %c0_i32_0 : i32, i32
  }
  func.func @transform_1(%arg0: i32) -> (i32, i32) {
    %c0_i32 = arith.constant 0 : i32
    %c0_i32_0 = arith.constant 0 : i32
    %c0_i32_1 = arith.constant 0 : i32
    return %c0_i32, %c0_i32_0 : i32, i32
  }
}

module attributes {stable_mosaic.version = 11 : i64} {
  func.func @_bert_intermediate_kernel(%arg0: i32, %arg1: memref<8x32xf32, #tpu.memory_space<vmem>>, %arg2: memref<32x128xf32, #tpu.memory_space<vmem>>, %arg3: memref<1x128xf32, #tpu.memory_space<vmem>>, %arg4: memref<8x128xf32, #tpu.memory_space<vmem>>) attributes {dimension_semantics = [#tpu.dimension_semantics<parallel>], iteration_bounds = array<i64: 2>, scalar_prefetch = 0 : i64, scratch_operands = 0 : i64, tpu.core_type = #tpu.core_type<tc>, window_params = [{transform_indices = @transform_0, window_bounds = array<i64: 8, 32>}, {pipeline_mode = #tpu.pipeline_mode<synchronous>, transform_indices = @transform_1, window_bounds = array<i64: 32, 128>}, {pipeline_mode = #tpu.pipeline_mode<synchronous>, transform_indices = @transform_2, window_bounds = array<i64: 1, 128>}, {transform_indices = @transform_3, window_bounds = array<i64: 8, 128>}]} {
    %c0 = arith.constant 0 : index
    %c0_0 = arith.constant 0 : index
    %0 = vector.load %arg1[%c0, %c0_0] : memref<8x32xf32, #tpu.memory_space<vmem>>, vector<8x32xf32>
    %c0_1 = arith.constant 0 : index
    %c0_2 = arith.constant 0 : index
    %1 = vector.load %arg2[%c0_1, %c0_2] : memref<32x128xf32, #tpu.memory_space<vmem>>, vector<32x128xf32>
    %cst = arith.constant dense<0.000000e+00> : vector<8x128xf32>
    %2 = tpu.matmul %0, %1, %cst {dimension_numbers = #tpu.dot_dimension_numbers<[1], [0], [0], [1], [0, 0, 1, 1], [], []>} : vector<8x32xf32>, vector<32x128xf32>, vector<8x128xf32> -> vector<8x128xf32>
    %c0_3 = arith.constant 0 : index
    %c0_4 = arith.constant 0 : index
    %3 = vector.load %arg3[%c0_3, %c0_4] : memref<1x128xf32, #tpu.memory_space<vmem>>, vector<1x128xf32>
    %4 = vector.broadcast %3 : vector<1x128xf32> to vector<8x128xf32>
    %5 = arith.addf %2, %4 : vector<8x128xf32>
    %cst_5 = arith.constant 5.000000e-01 : f32
    %6 = vector.broadcast %cst_5 : f32 to vector<8x128xf32>
    %7 = arith.mulf %5, %6 : vector<8x128xf32>
    %cst_6 = arith.constant 0.707106769 : f32
    %8 = vector.broadcast %cst_6 : f32 to vector<8x128xf32>
    %9 = arith.mulf %5, %8 : vector<8x128xf32>
    %10 = math.erf %9 : vector<8x128xf32>
    %cst_7 = arith.constant 1.000000e+00 : f32
    %11 = vector.broadcast %cst_7 : f32 to vector<8x128xf32>
    %12 = arith.addf %11, %10 : vector<8x128xf32>
    %13 = arith.mulf %7, %12 : vector<8x128xf32>
    %c0_8 = arith.constant 0 : index
    %c0_9 = arith.constant 0 : index
    %14 = vector.load %arg4[%c0_8, %c0_9] : memref<8x128xf32, #tpu.memory_space<vmem>>, vector<8x128xf32>
    tpu.vector_store %arg4[%c0_8, %c0_9], %13 {strides = array<i32>} : memref<8x128xf32, #tpu.memory_space<vmem>>, vector<8x128xf32>,
    return
  }
  func.func @transform_0(%arg0: i32) -> (i32, i32) {
    %c0_i32 = arith.constant 0 : i32
    %c0_i32_0 = arith.constant 0 : i32
    return %arg0, %c0_i32 : i32, i32
  }
  func.func @transform_1(%arg0: i32) -> (i32, i32) {
    %c0_i32 = arith.constant 0 : i32
    %c0_i32_0 = arith.constant 0 : i32
    %c0_i32_1 = arith.constant 0 : i32
    return %c0_i32, %c0_i32_0 : i32, i32
  }
  func.func @transform_2(%arg0: i32) -> (i32, i32) {
    %c0_i32 = arith.constant 0 : i32
    %c0_i32_0 = arith.constant 0 : i32
    %c0_i32_1 = arith.constant 0 : i32
    return %c0_i32, %c0_i32_0 : i32, i32
  }
  func.func @transform_3(%arg0: i32) -> (i32, i32) {
    %c0_i32 = arith.constant 0 : i32
    %c0_i32_0 = arith.constant 0 : i32
    return %arg0, %c0_i32 : i32, i32
  }
}

</mosaic_0001>

<bundles_post_ra>
// kernel: tpu_custom_call.1
= control target key start
LH: loop header
LB: loop body
LE: loop exit
PB: predicated region body
PF: predicated region fallthrough
CT: control target
= control target key end

     0   :  { %6 = vsyncpa [#allocation3], 0  ;;  %s124_s0 = inlined_call_operand.hbm [shape: f32[8,128], index: 0, kind: input, shape index: {}]   ;;  %s125_s1 = inlined_call_operand.hbm [shape: f32[8,128], index: 1, kind: output, shape index: {}]  }
   0x1   :  { %7 = vsyncpa [#allocation4], 0  ;;  %s88_s6 = smov [#allocation2]   ;;  %s40_s10 = scalar_lea.hbm %s124_s0, 128 }
   0x2   :  { %s14_s7 = sshll.u32 %s88_s6, 4  ;;  %p41_p0 = scmp.ne.s32.totalorder %s124_s0, %s40_s10  ;;  %s15_s7 = int_to_ptr.vmem [resolvable:$true] %s14_s7 }
   0x3   :  { %p44_p1 = scmp.lt.u32.totalorder %s40_s10, %s124_s0 }
   0x5   :  { %p46_p2 = pnand %p44_p1, %p41_p0 }
   0x7   :  { %49 = shalt.err (!%p46_p2)
}
   0x8   :  { %s50_s15 = scalar_lea.vmem %s15_s7, 128  ;;  %p55_p4 = scmp.lt.s32.totalorder %s15_s7, %s15_s7 }
   0x9   :  { %p51_p3 = scmp.ne.s32.totalorder %s15_s7, %s50_s15  ;;  %p56_p5 = scmp.lt.s32.totalorder %s50_s15, %s50_s15 }
   0xb   :  { %p57_p6 = por %p56_p5, %p55_p4 }
   0xd   :  { %p58_p7 = pnand %p57_p6, %p51_p3 }
   0xf   :  { %61 = shalt.err (!%p58_p7)
}
  0x10   :  { %17 = dma.hbm_to_vmem [thread:$0]  %s124_s0, 128, %s15_s7, [#allocation3]  }
  0x11   :  { %84 = dma.done.wait [#allocation3], 128  }
  0x12   :  { %85 = vsyncadd [#allocation3], 4294967168  ;;  %s89_s18 = smov [#allocation5]   ;;  %v21_v0 = vld [vmem:[#allocation2] sm:$0xff] }
  0x13   :  { %s29_s19 = sshll.u32 %s89_s18, 4  ;;  %22 = vst [vmem:[#allocation5] sm:$0xff] %v21_v0  ;;  %s30_s19 = int_to_ptr.vmem [resolvable:$true] %s29_s19 }
  0x14   :  { %s62_s20 = scalar_lea.vmem %s30_s19, 128  ;;  %p67_p9 = scmp.lt.s32.totalorder %s30_s19, %s30_s19 }
  0x15   :  { %p63_p8 = scmp.ne.s32.totalorder %s30_s19, %s62_s20  ;;  %p68_p10 = scmp.lt.s32.totalorder %s62_s20, %s62_s20 }
  0x17   :  { %p69_p11 = por %p68_p10, %p67_p9 }
  0x19   :  { %p70_p12 = pnand %p69_p11, %p63_p8 }
  0x1b   :  { %73 = shalt.err (!%p70_p12)
}
  0x1c   :  { %s74_s23 = scalar_lea.hbm %s125_s1, 128 }
  0x1d   :  { %p75_p13 = scmp.ne.s32.totalorder %s125_s1, %s74_s23  ;;  %p78_p0 = scmp.lt.u32.totalorder %s74_s23, %s125_s1 }
  0x1f   :  { %p80_p1 = pnand %p78_p0, %p75_p13 }
  0x21   :  { %83 = shalt.err (!%p80_p1)
}
  0x22   :  { %32 = dma.vmem_to_hbm [thread:$0]  %s30_s19, 128, %s125_s1, [#allocation4]  }
  0x23   :  { %86 = dma.done.wait [#allocation4], 128  }
  0x24   :  { %87 = vsyncadd [#allocation4], 4294967168 }
  0x25   :  { %36 = vsyncpa [#allocation3], 1 }
  0x26   :  { %37 = vsyncpa [#allocation4], 1 }

// kernel: bert_intermediate.1
= control target key start
LH: loop header
LB: loop body
LE: loop exit
PB: predicated region body
PF: predicated region fallthrough
CT: control target
= control target key end

     0   :  { %8 = vsyncpa [#allocation3], 0  ;;  %s850_s0 = inlined_call_operand.hbm [shape: f32[16,32], index: 0, kind: input, shape index: {}]   ;;  %s851_s1 = inlined_call_operand.hbm [shape: f32[32,128], index: 1, kind: input, shape index: {}]   ;;  %s852_s2 = inlined_call_operand.vmem [shape: f32[1,128], index: 2, kind: input, shape index: {}]   ;;  %s853_s3 = inlined_call_operand.hbm [shape: f32[16,128], index: 3, kind: output, shape index: {}]  }
   0x1   :  { %10 = vsyncpa [#allocation3 + $0x1], 0 }
   0x2   :  { %11 = vsyncpa [#allocation6], 0 }
   0x3   :  { %12 = vsyncpa [#allocation4], 0 }
   0x4   :  { %14 = vsyncpa [#allocation4 + $0x1], 0  ;;  %s647_s12 = smov 0   ;;  %s649_s13 = smov 0  }
   0x5   :  { %s651_s14 = smov 0   ;;  %s653_s15 = smov 0  }
   0x6 LB: > { %s668_s16 = sadd.s32 4294967295, %s617_s15   ;;  %s387_s17 = sadd.s32 4294967294, %s617_s15   ;;  %s617_s15 = sphi %s653_s15, %s873_s15   ;;  %s613_s14 = sphi %s651_s14, %s872_s14   ;;  %s609_s13 = sphi %s649_s13, %s871_s13   ;;  %s605_s12 = sphi %s647_s12, %s870_s12  }
   0x7   : > { %p40_p0 = scmp.ne.s32.totalorder %s609_s13, %s605_s12  ;;  %p854_p1 = scmp.eq.s32.totalorder %s668_s16, 0 }
   0x8   : > { %p112_p3 = scmp.eq.s32.totalorder %s387_s17, 1  ;;  %p388_p5 = scmp.ge.s32.totalorder %s617_s15, 1 }
   0x9   : > { %p677_p4 = por %p854_p1, %p40_p0  ;;  %p119_p7 = scmp.lt.s32.totalorder %s617_s15, 3 }
   0xa   : > { %p682_p6 = por %p112_p3, %p40_p0  ;;  %s619_s21 = smov [#allocation5]  }
   0xb   : > { %s857_s18 = scalar_select %p677_p4, 1, 0 }
   0xc   : > { %s858_s19 = scalar_select %p682_p6, 1, 0 }
   0xd   : > { %p687_p8 = pnand %p388_p5, %p119_p7  ;;  %s131_s22 = sshll.u32 %s619_s21, 4  ;;  %s691_s22 = int_to_ptr.vmem [resolvable:$true] %s131_s22 }
   0xe   : > { %s703_s24 = sadd.s32 1, %s617_s15   ;;  %s27_s25 = sadd.s32 1, %s613_s14 }
   0xf   : > { %s859_s20 = scalar_select %p687_p8, 1, 0 }
  0x10   : > { %p433_p9 = pneg %p687_p8  ;;  %s24_s26 = ssub.s32 %s617_s15, %s703_s24 }
  0x11   : > { %s489_s29 = scalar_lea.hbm %s851_s1, 512 }
  0x12   : > { %p698_p11 = pnand %p433_p9, %p854_p1  ;;  %p490_p12 = scmp.ne.s32.totalorder %s851_s1, %s489_s29 }
  0x13   : > { %p496_p5 = scmp.lt.u32.totalorder %s489_s29, %s851_s1 }
  0x14   : > { %p491_p13 = pneg %p698_p11 }
  0x16   : > { %p492_p0 = pnand %p491_p13, %p490_p12 }
  0x18   : > { %p493_p3 = pneg %p492_p0 }
  0x1a   : > { %p498_p7 = pnand %p496_p5, %p493_p3 }
  0x1c   : > { %501 = shalt.err (!%p498_p7)
}
  0x1d   : > { %s502_s7 = scalar_lea.vmem %s691_s22, 512  ;;  %p510_p2 = scmp.lt.s32.totalorder %s691_s22, %s691_s22 }
  0x1e   : > { %p503_p9 = scmp.ne.s32.totalorder %s691_s22, %s502_s7  ;;  %p511_p6 = scmp.lt.s32.totalorder %s502_s7, %s502_s7 }
  0x20   : > { %p505_p10 = pnand %p503_p9, %p491_p13  ;;  %p512_p4 = por %p511_p6, %p510_p2 }
  0x22   : > { %p506_p1 = pneg %p505_p10 }
  0x24   : > { %p513_p8 = pnand %p512_p4, %p506_p1 }
  0x26   : > { %516 = shalt.err (!%p513_p8)
}
  0x27   : > { %s620_s8 = smov 128   ;;  %s621_s9 = smov 8  }
  0x28   : > { %436 = dma.hbm_to_vmem [thread:$0]  (!%p698_p11), %s851_s1, 512, %s691_s22, [#allocation6], %s620_s8, %s620_s8, %s621_s9  }
  0x29   : > { %p25_p2 = scmp.eq.s32.totalorder %s24_s26, 0  ;;  %p34_p1 = scmp.ne.s32.totalorder %s613_s14, %s609_s13 }
  0x2a   : > { %p35_p4 = scmp.eq.s32.totalorder %s617_s15, 0  ;;  %p446_p6 = scmp.lt.s32.totalorder %s617_s15, 2 }
  0x2b   : > { %s734_s17 = scalar_select %p25_p2, %s613_s14, %s27_s25  }
  0x2c   : > { %p36_p8 = por %p35_p4, %p34_p1  ;;  %p861_p10 = scmp.eq.s32.totalorder %s668_s16, 1 }
  0x2d   : > { %s148_s27 = sand.u32 1, %s613_s14   ;;  %s392_s28 = sshll.u32 %s617_s15, 7 }
  0x2e   : > { %p738_p12 = por %p861_p10, %p34_p1  ;;  %s391_s29 = sshll.u32 %s148_s27, 3 }
  0x2f   : > { %s747_s4 = scalar_lea.hbm %s850_s0, %s392_s28  ;;  %s152_s22 = scalar_lea.vmem [#allocation2], %s391_s29 }
  0x30   : > { %s159_s25 = sshll.u32 %s152_s22, 4  ;;  %p749_p11 = pnand %p446_p6, %p36_p8  ;;  %s753_s25 = int_to_ptr.vmem [resolvable:$true] %s159_s25 }
  0x31   : > { %s149_s5 = scalar_lea.sflag [#allocation3], %s148_s27  ;;  %s517_s6 = scalar_lea.hbm %s747_s4, 128 }
  0x32   : > { %p518_p13 = scmp.ne.s32.totalorder %s747_s4, %s517_s6  ;;  %p519_p0 = pneg %p749_p11 }
  0x33   : > { %s522_s9 = scalar_lea.hbm %s850_s0, 256  ;;  %p523_p7 = scmp.lt.u32.totalorder %s747_s4, %s850_s0 }
  0x34   : > { %p520_p3 = pnand %p519_p0, %p518_p13  ;;  %p524_p9 = scmp.lt.u32.totalorder %s522_s9, %s517_s6 }
  0x35   : > { %p526_p1 = scmp.lt.u32.totalorder %s517_s6, %s747_s4 }
  0x36   : > { %p521_p5 = pneg %p520_p3  ;;  %p525_p2 = por %p524_p9, %p523_p7 }
  0x38   : > { %p527_p4 = por %p526_p1, %p525_p2 }
  0x3a   : > { %p528_p6 = pnand %p527_p4, %p521_p5 }
  0x3c   : > { %531 = shalt.err (!%p528_p6)
}
  0x3d   : > { %s532_s27 = scalar_lea.vmem %s753_s25, 128  ;;  %s622_s28 = smov [#allocation2]  }
  0x3e   : > { %p533_p8 = scmp.ne.s32.totalorder %s753_s25, %s532_s27  ;;  %s537_s29 = sshll.u32 %s622_s28, 4  ;;  %s538_s29 = int_to_ptr.vmem [resolvable:$false] %s537_s29 }
  0x3f   : > { %s539_s23 = scalar_lea.vmem %s538_s29, 256  ;;  %p540_p3 = scmp.lt.s32.totalorder %s753_s25, %s538_s29 }
  0x40   : > { %p535_p10 = pnand %p533_p8, %p519_p0  ;;  %p541_p7 = scmp.lt.s32.totalorder %s539_s23, %s532_s27 }
  0x42   : > { %p536_p13 = pneg %p535_p10  ;;  %p542_p9 = por %p541_p7, %p540_p3 }
  0x44   : > { %p543_p2 = pnand %p542_p9, %p536_p13 }
  0x46   : > { %546 = shalt.err (!%p543_p2)
}
  0x47   : > { %440 = dma.hbm_to_vmem [thread:$0]  (!%p749_p11), %s747_s4, 128, %s753_s25, %s149_s5  }
  0x48   : > { %p864_p5 = scmp.ne.s32.totalorder %s859_s20, 0 }
  0x49   : > { %s783_s30 = sand.u32 (!%p864_p5), 1, %s609_s13   ;;  %p865_p0 = scmp.ne.s32.totalorder (!%p864_p5), %s857_s18, 0 }
  0x4a   : > { %168 = sbr.rel (%p864_p5) target bundleno = 340 (0x154), region = 32  ;;  %s394_s22 = sshll.u32 (!%p864_p5), %s783_s30, 3 }
  0x4b   : > { %s171_s6 = scalar_lea.sflag (!%p864_p5), [#allocation3], %s783_s30  ;;  %s174_s7 = scalar_lea.vmem (!%p864_p5), [#allocation2], %s394_s22 }
  0x51   : > { %592 = dma.done.wait (%p865_p0), %s171_s6, 128  }
  0x52   : > { %594 = vsyncadd (%p865_p0), %s171_s6, 4294967168  ;;  %p866_p11 = scmp.eq.s32.totalorder %s668_s16, 0 }
  0x54   : > { %596 = dma.done.wait (%p866_p11), [#allocation6], 512   ;;  %p867_p1 = pmov %p866_p11 }
  0x55   : > { %v623_v0 = vmov 0.0|0.0   ;;  %vm624_vm0 = vmmov 0   ;;  %v625_v1 = vmov 0.0   ;;  %v202_v2 = vld [vmem:[#allocation5] sm:$0xff]  ;;  %v203_v3 = vld [vmem:[#allocation5 + $0x8] sm:$0xff]  ;;  %v204_v4 = vld [vmem:[#allocation5 + $0x10] sm:$0xff] }
  0x56   : > { %598 = vsyncadd (%p867_p1), [#allocation6], 4294966784  ;;  %419 = vmatprep.subr.bf16.mxu0 %v623_v0  ;;  %416 = vmatprep.mubr.msk.f32.mxu0 %vm624_vm0, %v625_v1  ;;  %v420_v5 = vpack.c.bf16 %v203_v3, %v202_v2  ;;  %v205_v6 = vld [vmem:[#allocation5 + $0x18] sm:$0xff]  ;;  %vm213_vm1 = vcmask 261120   ;;  %v397_v9 = vld [vmem:[%s852_s2] ss:$0 sm:$0xff] }
  0x57   : > { %v423_v7 = vpack.c.bf16 %v205_v6, %v204_v4  ;;  %v201_v8 = vld [vmem:[%s174_s7] sm:$0xff]  ;;  %s400_s4 = sshll.u32 %s668_s16, 7  ;;  %s200_s25 = scalar_lea.vmem [#allocation7], %s394_s22 }
  0x58   : > { %421 = vmatpush3.bf16.msra.mxu0 %v420_v5  ;;  %s307_s26 = sshll.u32 %s200_s25, 4  ;;  %s806_s9 = scalar_lea.hbm %s853_s3, %s400_s4  ;;  %s808_s26 = int_to_ptr.vmem [resolvable:$true] %s307_s26 }
  0x59   : > { %422 = vmatprep.subr.bf16.mxu0 %v623_v0  ;;  %s294_s10 = scalar_lea.sflag [#allocation4], %s783_s30  ;;  %s547_s11 = scalar_lea.vmem %s808_s26, 128 }
  0x5a   : > { %p548_p4 = scmp.ne.s32.totalorder %s808_s26, %s547_s11  ;;  %s626_s16 = smov [#allocation7]  }
  0x5b   : > { %s551_s27 = sshll.u32 %s626_s16, 4  ;;  %s552_s27 = int_to_ptr.vmem [resolvable:$false] %s551_s27 }
  0x5c   : > { %424 = vmatpush3.bf16.msra.mxu0 %v423_v7  ;;  %p549_p6 = pnand %p548_p4, %p738_p12  ;;  %s553_s28 = scalar_lea.vmem %s552_s27, 256 }
  0x5d   : > { %p554_p10 = scmp.lt.s32.totalorder %s808_s26, %s552_s27  ;;  %p555_p13 = scmp.lt.s32.totalorder %s553_s28, %s547_s11 }
  0x5e   : > { %p550_p8 = pneg %p549_p6 }
  0x5f   : > { %417 = vmatmul.mubr.msk.f32.vlgmr.msra.gmra.mrb[0].mxu0 %vm213_vm1, %v201_v8  ;;  %p556_p3 = por %p555_p13, %p554_p10 }
  0x61   : > { %p557_p7 = pnand %p556_p3, %p550_p8 }
 0x132   : > { %v283_v10 = vpop.f32.mrb[0].mxu0 }
 0x133   : > { %v284_v11 = vadd.f32 %v397_v9, %v283_v10  ;;  %v418_v12 = vpop.f32.mrb[1].mxu0 }
 0x135   : > { %v288_v13 = vmul.f32 0.70710677, %v284_v11  ;;  %v287_v15 = vmul.f32 0.5, %v284_v11 }
 0x137   : > { %487 = verf.f32 %v288_v13 }
 0x141   : > { %v488_v14 = vpop.eup %487 }
 0x142   : > { %v290_v16 = vadd.f32 1.0, %v488_v14 }
 0x144   : > { %v291_v17 = vmul.f32 %v290_v16, %v287_v15 }
 0x146   : > { %292 = vst [vmem:[%s200_s25] sm:$0xff] %v291_v17 }
 0x147   : > { %560 = shalt.err (!%p557_p7)
}
 0x148   : > { %s561_s29 = scalar_lea.hbm %s806_s9, 128  ;;  %s565_s22 = scalar_lea.hbm %s853_s3, 256 }
 0x149   : > { %p562_p9 = scmp.ne.s32.totalorder %s806_s9, %s561_s29  ;;  %p566_p0 = scmp.lt.u32.totalorder %s806_s9, %s853_s3 }
 0x14a   : > { %p567_p11 = scmp.lt.u32.totalorder %s565_s22, %s561_s29  ;;  %p569_p4 = scmp.lt.u32.totalorder %s561_s29, %s806_s9 }
 0x14b   : > { %p563_p2 = pnand %p562_p9, %p738_p12 }
 0x14c   : > { %p568_p1 = por %p567_p11, %p566_p0 }
 0x14d   : > { %p564_p5 = pneg %p563_p2 }
 0x14e   : > { %p570_p6 = por %p569_p4, %p568_p1 }
 0x150   : > { %p571_p8 = pnand %p570_p6, %p564_p5 }
 0x152   : > { %574 = shalt.err (!%p571_p8)
}
 0x153   : > { %431 = dma.vmem_to_hbm [thread:$0]  (%p738_p12), %s808_s26, 128, %s806_s9, %s294_s10  }
 0x154 PF: > { %s319_s18 = sand.u32 1, %s605_s12   ;;  %p868_p10 = scmp.ne.s32.totalorder %s858_s19, 0 }
 0x155   : > { %p869_p13 = scmp.ge.s32.totalorder %s617_s15, 2  ;;  %s320_s20 = scalar_lea.sflag [#allocation4], %s319_s18 }
 0x157   : > { %p442_p3 = pnand %p869_p13, %p868_p10 }
 0x159   : > { %600 = dma.done.wait (!%p442_p3), %s320_s20, 128  }
 0x15a   : > { %602 = vsyncadd (!%p442_p3), %s320_s20, 4294967168  ;;  %p17_p7 = scmp.ge.s32.totalorder %s703_s24, 4   ;;  %s870_s12 = smov %s609_s13 }
 0x15b   : > { %s871_s13 = smov %s613_s14  ;;  %s872_s14 = smov %s734_s17 }
 0x15c   : > { %s873_s15 = smov %s703_s24  ;;  %19 = sbr.rel (!%p17_p7) target bundleno = 6 (0x6), region = 81 }
 0x163   :  { %325 = vsyncpa [#allocation3], 1 }
 0x164   :  { %327 = vsyncpa [#allocation3 + $0x1], 1 }
 0x165   :  { %328 = vsyncpa [#allocation6], 1 }
 0x166   :  { %329 = vsyncpa [#allocation4], 1 }
 0x167   :  { %331 = vsyncpa [#allocation4 + $0x1], 1 }

</bundles_post_ra>
